<compile_context>
chip_gen: v5e
topology: v5e:2x2
jax: 0.10.0
libtpu: 0.0.40
codegen_flags: <defaults>
</compile_context>

<pallas_src>
import functools

import numpy as np
import jax
import jax.numpy as jnp
from jax.experimental import pallas as pl
from jax.experimental.pallas import tpu as pltpu

_MIB = 1024 * 1024


# ---------------------------------------------------------------------------
# Kernels (all cast to the compute dtype in-kernel; f32 MXU accumulation)
# ---------------------------------------------------------------------------

def _single_block_kernel(compute_dtype, adj_ref, x_ref, out_ref):
    """Whole problem resident in VMEM: one MXU matmul."""
    out_ref[...] = jnp.dot(
        adj_ref[...].astype(compute_dtype),
        x_ref[...].astype(compute_dtype),
        preferred_element_type=jnp.float32,
    ).astype(out_ref.dtype)


def _dense_kernel(compute_dtype, adj_ref, x_ref, out_ref):
    """Dense tiled matmul; x streamed per k block; init fused into k==0."""
    k = pl.program_id(2)
    prod = jnp.dot(
        adj_ref[...].astype(compute_dtype),
        x_ref[...].astype(compute_dtype),
        preferred_element_type=jnp.float32,
    )

    @pl.when(k == 0)
    def _():
        out_ref[...] = prod

    @pl.when(k > 0)
    def _():
        out_ref[...] += prod


def _dense_resident_x_kernel(compute_dtype, tk, adj_ref, x_ref, out_ref):
    """Dense tiled matmul; x fully VMEM-resident, sliced in-kernel."""
    k = pl.program_id(2)
    start = pl.multiple_of(k * tk, tk)
    xb = x_ref[pl.ds(start, tk), :].astype(compute_dtype)
    prod = jnp.dot(adj_ref[...].astype(compute_dtype), xb,
                   preferred_element_type=jnp.float32)

    @pl.when(k == 0)
    def _():
        out_ref[...] = prod

    @pl.when(k > 0)
    def _():
        out_ref[...] += prod


def _bs_kernel(compute_dtype, kblk_ref, kcnt_ref, adj_ref, x_ref, out_ref):
    """Block-sparse; x streamed per nonzero k block; init fused into step 0."""
    i = pl.program_id(0)
    k = pl.program_id(2)
    cnt = kcnt_ref[i]

    @pl.when(jnp.logical_and(k == 0, cnt == 0))
    def _():  # fully empty row block
        out_ref[...] = jnp.zeros_like(out_ref)

    @pl.when(k < cnt)
    def _():
        prod = jnp.dot(
            adj_ref[...].astype(compute_dtype),
            x_ref[...].astype(compute_dtype),
            preferred_element_type=jnp.float32,
        )

        @pl.when(k == 0)
        def _():
            out_ref[...] = prod

        @pl.when(k > 0)
        def _():
            out_ref[...] += prod


def _bs_resident_x_kernel(compute_dtype, tk, kblk_ref, kcnt_ref,
                          adj_ref, x_ref, out_ref):
    """Block-sparse; x fully VMEM-resident, dynamic k-block slice in-kernel."""
    i = pl.program_id(0)
    k = pl.program_id(2)
    cnt = kcnt_ref[i]

    @pl.when(jnp.logical_and(k == 0, cnt == 0))
    def _():
        out_ref[...] = jnp.zeros_like(out_ref)

    @pl.when(k < cnt)
    def _():
        start = pl.multiple_of(kblk_ref[i, k] * tk, tk)
        xb = x_ref[pl.ds(start, tk), :].astype(compute_dtype)
        prod = jnp.dot(adj_ref[...].astype(compute_dtype), xb,
                       preferred_element_type=jnp.float32)

        @pl.when(k == 0)
        def _():
            out_ref[...] = prod

        @pl.when(k > 0)
        def _():
            out_ref[...] += prod


# ---------------------------------------------------------------------------
# Host-side helpers
# ---------------------------------------------------------------------------

def _pick_tile(dim, candidates):
    for c in candidates:
        if c <= dim and dim % c == 0:
            return c
    return dim


def _vmem_capacity_bytes():
    try:
        return int(pltpu.get_tpu_info().vmem_capacity_bytes)
    except Exception:
        return 128 * _MIB


def _buffered_spec(block_shape, index_map, nbuf):
    """BlockSpec with >2-deep pipelining when requested & supported."""
    if nbuf > 2:
        try:
            return pl.BlockSpec(block_shape, index_map,
                                pipeline_mode=pl.Buffered(nbuf))
        except Exception:
            pass
    return pl.BlockSpec(block_shape, index_map)


def _block_sparsity_metadata(adj_np, tm, tk):
    """Block-CSR structure of adj at (tm, tk) granularity (host side).

    # TODO(synk): a real torch.sparse COO/CSR adjacency would provide this
    # directly from its indices; here it is derived from the dense host array.
    """
    n, kdim = adj_np.shape
    nbi, nbk = n // tm, kdim // tk
    nz = (adj_np.reshape(nbi, tm, nbk, tk) != 0).any(axis=(1, 3))  # [nbi, nbk]
    frac = float(nz.mean())
    counts = nz.sum(axis=1).astype(np.int32)
    max_nnz = int(max(int(counts.max()), 1))
    kblk = np.zeros((nbi, max_nnz), dtype=np.int32)
    for i in range(nbi):
        ids = np.nonzero(nz[i])[0].astype(np.int32)
        if ids.size:
            kblk[i, :ids.size] = ids
            kblk[i, ids.size:] = ids[-1]  # padded steps: same block id -> no DMA
    return jnp.asarray(kblk), jnp.asarray(counts), max_nnz, frac


# ---------------------------------------------------------------------------
# Public wrapper
# ---------------------------------------------------------------------------

def graph_convolution(adj, x, *, force_tiled=False, compute_dtype=jnp.bfloat16,
                      tile_m=None, tile_k=None, _force_tiled_x=False):
    """output = adj @ x   (adj: [N, K] dense-stored sparse, x: [K, F])."""
    N, K = adj.shape
    K2, F = x.shape
    assert K == K2, "adj columns must match input rows"

    # ---- per-generation budgets -------------------------------------------
    vmem = _vmem_capacity_bytes()
    small_vmem = vmem <= 96 * _MIB            # v7x-like: 64 MiB VMEM per TC
    vmem_limit = (48 if small_vmem else 64) * _MIB

    # ---- lane-dense feature dim (pad F up to a multiple of 128) ------------
    Fp = max(128, ((F + 127) // 128) * 128)
    x_in = x if Fp == F else jnp.pad(x, ((0, 0), (0, Fp - F)))

    out_dtype = jnp.float32
    adj_isz = jnp.dtype(adj.dtype).itemsize
    x_isz = jnp.dtype(x_in.dtype).itemsize

    def _finish(out):
        if Fp != F:
            out = out[:, :F]
        if out.dtype != x.dtype:
            out = out.astype(x.dtype)
        return out

    # ---- fast path: whole problem in one VMEM-resident block ---------------
    buf_bytes = 2 * (N * K * adj_isz + K * Fp * x_isz + N * Fp * 4)
    fast_budget = (12 if small_vmem else 24) * _MIB
    if not force_tiled and buf_bytes <= fast_budget:
        out = pl.pallas_call(
            functools.partial(_single_block_kernel, compute_dtype),
            out_shape=jax.ShapeDtypeStruct((N, Fp), out_dtype),
            grid=(1,),
            in_specs=[pl.BlockSpec((N, K), lambda i: (0, 0)),
                      pl.BlockSpec((K, Fp), lambda i: (0, 0))],
            out_specs=pl.BlockSpec((N, Fp), lambda i: (0, 0)),
            compiler_params=pltpu.CompilerParams(
                dimension_semantics=("arbitrary",),
                vmem_limit_bytes=vmem_limit),
        )(adj, x_in)
        return _finish(out)

    # ---- tile selection -----------------------------------------------------
    if tile_m is not None:
        tm = tile_m
    elif small_vmem:
        # v7x: 2 TensorCores -> keep >= 2 parallel i steps, but never < 256 rows
        tm = _pick_tile(N, (512, 256))
        if N // tm < 2 and tm > 256 and N % 256 == 0:
            tm = 256
    else:
        # v5e/v6e: 1 TensorCore, 128 MiB VMEM -> large row tiles (higher AI)
        tm = _pick_tile(N, (1024, 512, 256, 128))
    tk = tile_k if tile_k is not None else _pick_tile(K, (256, 128))
    assert N % tm == 0 and K % tk == 0, "tile sizes must divide array dims"

    nbuf_adj = 3 if (K // tk) >= 4 else 2     # deeper pipelining only if useful
    budget = vmem_limit - 8 * _MIB            # headroom

    def _tiled_bytes(tn_):
        return (nbuf_adj * tm * tk * adj_isz      # adj pipeline buffers
                + 2 * tm * tn_ * 4                # f32 output tile buffers
                + nbuf_adj * tk * tn_ * x_isz)    # streamed-x buffers

    tn = Fp
    while tn > 128 and (tn // 2) % 128 == 0 and _tiled_bytes(tn) > budget:
        tn //= 2

    x_resident = (not _force_tiled_x) and (
        nbuf_adj * tm * tk * adj_isz + 2 * tm * tn * 4 + 2 * K * tn * x_isz
        <= budget)

    # ---- dense vs block-sparse decision -------------------------------------
    try:
        adj_np = np.asarray(adj)     # fails for tracers under jit -> dense path
    except Exception:
        adj_np = None

    use_bs = False
    if adj_np is not None and (K // tk) > 1:
        kblk, kcnt, max_nnz, frac = _block_sparsity_metadata(adj_np, tm, tk)
        use_bs = frac <= 0.8         # dense-ish adjacency: skip the table overhead

    cparams = pltpu.CompilerParams(
        dimension_semantics=("parallel", "parallel", "arbitrary"),
        vmem_limit_bytes=vmem_limit)
    out_shape = jax.ShapeDtypeStruct((N, Fp), out_dtype)
    grid_j = Fp // tn

    if use_bs:
        adj_spec = _buffered_spec((tm, tk),
                                  lambda i, j, k, kb, kc: (i, kb[i, k]), nbuf_adj)
        if x_resident:
            kernel = functools.partial(_bs_resident_x_kernel, compute_dtype, tk)
            x_spec = pl.BlockSpec((K, tn), lambda i, j, k, kb, kc: (0, j))
        else:
            kernel = functools.partial(_bs_kernel, compute_dtype)
            x_spec = _buffered_spec((tk, tn),
                                    lambda i, j, k, kb, kc: (kb[i, k], j), nbuf_adj)
        out = pl.pallas_call(
            kernel,
            out_shape=out_shape,
            grid_spec=pltpu.PrefetchScalarGridSpec(
                num_scalar_prefetch=2,
                grid=(N // tm, grid_j, max_nnz),
                in_specs=[adj_spec, x_spec],
                out_specs=pl.BlockSpec((tm, tn), lambda i, j, k, kb, kc: (i, j))),
            compiler_params=cparams,
        )(kblk, kcnt, adj, x_in)
        return _finish(out)

    # dense tiled path
    adj_spec = _buffered_spec((tm, tk), lambda i, j, k: (i, k), nbuf_adj)
    if x_resident:
        kernel = functools.partial(_dense_resident_x_kernel, compute_dtype, tk)
        x_spec = pl.BlockSpec((K, tn), lambda i, j, k: (0, j))
    else:
        kernel = functools.partial(_dense_kernel, compute_dtype)
        x_spec = _buffered_spec((tk, tn), lambda i, j, k: (k, j), nbuf_adj)
    out = pl.pallas_call(
        kernel,
        out_shape=out_shape,
        grid=(N // tm, grid_j, K // tk),
        in_specs=[adj_spec, x_spec],
        out_specs=pl.BlockSpec((tm, tn), lambda i, j, k: (i, j)),
        compiler_params=cparams,
    )(adj, x_in)
    return _finish(out)


# ---------------------------------------------------------------------------
# Demo / self-test
# ---------------------------------------------------------------------------

if __name__ == "__main__":
    key = jax.random.PRNGKey(0)
    k_adj, k_x, k_mask, k_a2, k_m2, k_x2 = jax.random.split(key, 6)

    # --- problem 1: GraphConvolution(128, 128), 256-node random sparse graph
    n_nodes, in_features = 256, 128
    raw = jax.random.uniform(k_adj, (n_nodes, n_nodes), dtype=jnp.float32)
    mask = (jax.random.uniform(k_mask, (n_nodes, n_nodes)) < 0.1).astype(jnp.float32)
    adj = raw * mask
    adj = adj / jnp.maximum(adj.sum(axis=1, keepdims=True), 1e-6)
    x = jax.random.normal(k_x, (n_nodes, in_features), dtype=jnp.float32)
    ref1 = adj @ x

    # --- problem 2: block-structured sparse graph (exercises block-CSR path)
    n2, f2 = 768, 128
    raw2 = jax.random.uniform(k_a2, (n2, n2), dtype=jnp.float32)
    mask2 = (jax.random.uniform(k_m2, (n2, n2)) < 0.1).astype(jnp.float32)
    blk = np.zeros((3, 3), dtype=np.float32)
    blk[0, 0] = blk[0, 2] = blk[2, 1] = 1.0       # row block 1 fully empty
    block_mask = jnp.asarray(np.kron(blk, np.ones((256, 256), np.float32)))
    adj2 = raw2 * mask2 * block_mask
    adj2 = adj2 / jnp.maximum(adj2.sum(axis=1, keepdims=True), 1e-6)
    x2 = jax.random.normal(k_x2, (n2, f2), dtype=jnp.float32)
    ref2 = adj2 @ x2

    outs = [
        (jax.block_until_ready(graph_convolution(adj, x)), ref1),                     # single-block
        (jax.block_until_ready(graph_convolution(adj, x, force_tiled=True)), ref1),   # dense, resident x
        (jax.block_until_ready(graph_convolution(adj, x, force_tiled=True,
                                                 _force_tiled_x=True)), ref1),        # dense, streamed x
        (jax.block_until_ready(graph_convolution(adj2, x2, force_tiled=True,
                                                 tile_m=256, tile_k=256)), ref2),     # block-sparse, resident x
        (jax.block_until_ready(graph_convolution(adj2, x2, force_tiled=True,
                                                 tile_m=256, tile_k=256,
                                                 _force_tiled_x=True)), ref2),        # block-sparse, streamed x
    ]

    for out, ref in outs:
        assert out.shape == ref.shape
        # bf16 operands with f32 accumulation: slightly looser tolerance vs f32 ref
        assert jnp.allclose(out, ref, atol=2e-2, rtol=2e-2), \
            float(jnp.max(jnp.abs(out - ref)))

    print("KERNEL_OK")
</pallas_src>

<mosaic_0001>
module attributes {stable_mosaic.version = 11 : i64} {
  func.func @_single_block_kernel(%arg0: i32, %arg1: memref<256x256xf32, #tpu.memory_space<vmem>>, %arg2: memref<256x128xf32, #tpu.memory_space<vmem>>, %arg3: memref<256x128xf32, #tpu.memory_space<vmem>>) attributes {dimension_semantics = [#tpu.dimension_semantics<arbitrary>], iteration_bounds = array<i64: 1>, scalar_prefetch = 0 : i64, scratch_operands = 0 : i64, tpu.core_type = #tpu.core_type<tc>, window_params = [{pipeline_mode = #tpu.pipeline_mode<synchronous>, transform_indices = @transform_0, window_bounds = array<i64: 256, 256>}, {pipeline_mode = #tpu.pipeline_mode<synchronous>, transform_indices = @transform_1, window_bounds = array<i64: 256, 128>}, {pipeline_mode = #tpu.pipeline_mode<synchronous>, transform_indices = @transform_2, window_bounds = array<i64: 256, 128>}]} {
    %c0 = arith.constant 0 : index
    %c0_0 = arith.constant 0 : index
    %0 = vector.load %arg1[%c0, %c0_0] : memref<256x256xf32, #tpu.memory_space<vmem>>, vector<256x256xf32>
    %1 = arith.truncf %0 : vector<256x256xf32> to vector<256x256xbf16>
    %c0_1 = arith.constant 0 : index
    %c0_2 = arith.constant 0 : index
    %2 = vector.load %arg2[%c0_1, %c0_2] : memref<256x128xf32, #tpu.memory_space<vmem>>, vector<256x128xf32>
    %3 = arith.truncf %2 : vector<256x128xf32> to vector<256x128xbf16>
    %cst = arith.constant dense<0.000000e+00> : vector<256x128xf32>
    %4 = tpu.matmul %1, %3, %cst {dimension_numbers = #tpu.dot_dimension_numbers<[1], [0], [0], [1], [0, 0, 1, 1], [], []>} : vector<256x256xbf16>, vector<256x128xbf16>, vector<256x128xf32> -> vector<256x128xf32>
    %c0_3 = arith.constant 0 : index
    %c0_4 = arith.constant 0 : index
    %5 = vector.load %arg3[%c0_3, %c0_4] : memref<256x128xf32, #tpu.memory_space<vmem>>, vector<256x128xf32>
    tpu.vector_store %arg3[%c0_3, %c0_4], %4 {strides = array<i32>} : memref<256x128xf32, #tpu.memory_space<vmem>>, vector<256x128xf32>,
    return
  }
  func.func @transform_0(%arg0: i32) -> (i32, i32) {
    %c0_i32 = arith.constant 0 : i32
    %c0_i32_0 = arith.constant 0 : i32
    %c0_i32_1 = arith.constant 0 : i32
    return %c0_i32, %c0_i32_0 : i32, i32
  }
  func.func @transform_1(%arg0: i32) -> (i32, i32) {
    %c0_i32 = arith.constant 0 : i32
    %c0_i32_0 = arith.constant 0 : i32
    %c0_i32_1 = arith.constant 0 : i32
    return %c0_i32, %c0_i32_0 : i32, i32
  }
  func.func @transform_2(%arg0: i32) -> (i32, i32) {
    %c0_i32 = arith.constant 0 : i32
    %c0_i32_0 = arith.constant 0 : i32
    %c0_i32_1 = arith.constant 0 : i32
    return %c0_i32, %c0_i32_0 : i32, i32
  }
}

</mosaic_0001>

<bundles_post_ra>
// kernel: tpu_custom_call.1
= control target key start
LH: loop header
LB: loop body
LE: loop exit
PB: predicated region body
PF: predicated region fallthrough
CT: control target
= control target key end

     0   :  { %7 = vsyncpa [#allocation3], 0  ;;  %s556_s0 = inlined_call_operand.hbm [shape: f32[256,256], index: 0, kind: input, shape index: {}]   ;;  %s557_s1 = inlined_call_operand.hbm [shape: f32[256,128], index: 1, kind: input, shape index: {}]   ;;  %s558_s2 = inlined_call_operand.hbm [shape: f32[256,128], index: 2, kind: output, shape index: {}]  }
   0x1   :  { %8 = vsyncpa [#allocation6], 0 }
   0x2   :  { %9 = vsyncpa [#allocation4], 0  ;;  %s14_s11 = sshll.u32 %s556_s0, 4  ;;  %s519_s12 = smov [#allocation2]   ;;  %s15_s11 = int_to_ptr.hbm [resolvable:$true] %s14_s11 }
   0x3   :  { %s16_s13 = sshll.u32 %s519_s12, 4  ;;  %s27_s16 = sshll.u32 %s557_s1, 4  ;;  %s17_s13 = int_to_ptr.vmem [resolvable:$true] %s16_s13  ;;  %s28_s16 = int_to_ptr.hbm [resolvable:$true] %s27_s16 }
   0x4   :  { %s520_s17 = smov 256   ;;  %s521_s18 = smov 16  }
   0x5   :  { %22 = dma.hbm_to_vmem [thread:$0]  %s15_s11, 8192, %s17_s13, [#allocation3], %s520_s17, %s520_s17, %s521_s18  }
   0x6   :  { %s522_s19 = smov [#allocation5]   ;;  %s523_s21 = smov 128  }
   0x7   :  { %s29_s20 = sshll.u32 %s522_s19, 4  ;;  %s524_s22 = smov 8   ;;  %s30_s20 = int_to_ptr.vmem [resolvable:$true] %s29_s20 }
   0x8   :  { %35 = dma.hbm_to_vmem [thread:$0]  %s28_s16, 4096, %s30_s20, [#allocation6], %s523_s21, %s523_s21, %s524_s22  }
   0x9   :  { %513 = dma.done.wait [#allocation3], 8192  }
   0xa   :  { %514 = vsyncadd [#allocation3], 4294959104 }
   0xb   :  { %515 = dma.done.wait [#allocation6], 4096  }
   0xc   :  { %516 = vsyncadd [#allocation6], 4294963200  ;;  %v154_v0 = vld [vmem:[#allocation5 + $0x70] sm:$0xff]  ;;  %v155_v1 = vld [vmem:[#allocation5 + $0x78] sm:$0xff]  ;;  %s525_s0 = smov [#allocation7]   ;;  %s404_s25 = sshll.u32 %s558_s2, 4  ;;  %s405_s25 = int_to_ptr.hbm [resolvable:$true] %s404_s25 }
   0xd   :  { %v170_v2 = vld [vmem:[#allocation5 + $0xf0] sm:$0xff]  ;;  %v179_v3 = vpack.c.bf16 %v155_v1, %v154_v0  ;;  %v171_v4 = vld [vmem:[#allocation5 + $0xf8] sm:$0xff]  ;;  %v152_v5 = vld [vmem:[#allocation5 + $0x60] sm:$0xff]  ;;  %s402_s1 = sshll.u32 %s525_s0, 4  ;;  %s403_s1 = int_to_ptr.vmem [resolvable:$true] %s402_s1 }
   0xe   :  { %v153_v6 = vld [vmem:[#allocation5 + $0x68] sm:$0xff]  ;;  %v187_v7 = vpack.c.bf16 %v171_v4, %v170_v2  ;;  %v168_v8 = vld [vmem:[#allocation5 + $0xe0] sm:$0xff]  ;;  %v150_v12 = vld [vmem:[#allocation5 + $0x50] sm:$0xff] }
   0xf   :  { %v169_v9 = vld [vmem:[#allocation5 + $0xe8] sm:$0xff]  ;;  %188 = vmatpush.bf16.msra.mxu0 %v179_v3  ;;  %418 = vmatpush.bf16.msra.mxu2 %v179_v3  ;;  %v178_v10 = vpack.c.bf16 %v153_v6, %v152_v5  ;;  %v151_v13 = vld [vmem:[#allocation5 + $0x58] sm:$0xff]  ;;  %v166_v14 = vld [vmem:[#allocation5 + $0xd0] sm:$0xff] }
  0x10   :  { %277 = vmatpush.bf16.msra.mxu1 %v187_v7  ;;  %426 = vmatpush.bf16.msra.mxu3 %v187_v7  ;;  %v186_v11 = vpack.c.bf16 %v169_v9, %v168_v8  ;;  %v167_v15 = vld [vmem:[#allocation5 + $0xd8] sm:$0xff]  ;;  %v177_v16 = vpack.c.bf16 %v151_v13, %v150_v12  ;;  %v148_v18 = vld [vmem:[#allocation5 + $0x40] sm:$0xff]  ;;  %v149_v19 = vld [vmem:[#allocation5 + $0x48] sm:$0xff] }
  0x11   :  { %v185_v17 = vpack.c.bf16 %v167_v15, %v166_v14  ;;  %v164_v20 = vld [vmem:[#allocation5 + $0xc0] sm:$0xff]  ;;  %v165_v21 = vld [vmem:[#allocation5 + $0xc8] sm:$0xff]  ;;  %v176_v22 = vpack.c.bf16 %v149_v19, %v148_v18  ;;  %v146_v24 = vld [vmem:[#allocation5 + $0x30] sm:$0xff] }
  0x12   :  { %v184_v23 = vpack.c.bf16 %v165_v21, %v164_v20  ;;  %v147_v25 = vld [vmem:[#allocation5 + $0x38] sm:$0xff]  ;;  %v162_v26 = vld [vmem:[#allocation5 + $0xb0] sm:$0xff]  ;;  %v144_v30 = vld [vmem:[#allocation5 + $0x20] sm:$0xff] }
  0x13   :  { %189 = vmatpush.bf16.msra.mxu0 %v178_v10  ;;  %419 = vmatpush.bf16.msra.mxu2 %v178_v10  ;;  %v163_v27 = vld [vmem:[#allocation5 + $0xb8] sm:$0xff]  ;;  %v175_v28 = vpack.c.bf16 %v147_v25, %v146_v24  ;;  %v145_v31 = vld [vmem:[#allocation5 + $0x28] sm:$0xff]  ;;  %v160_v32 = vld [vmem:[#allocation5 + $0xa0] sm:$0xff] }
  0x14   :  { %278 = vmatpush.bf16.msra.mxu1 %v186_v11  ;;  %427 = vmatpush.bf16.msra.mxu3 %v186_v11  ;;  %v183_v29 = vpack.c.bf16 %v163_v27, %v162_v26  ;;  %v161_v33 = vld [vmem:[#allocation5 + $0xa8] sm:$0xff]  ;;  %v174_v34 = vpack.c.bf16 %v145_v31, %v144_v30  ;;  %v142_v36 = vld [vmem:[#allocation5 + $0x10] sm:$0xff]  ;;  %v143_v37 = vld [vmem:[#allocation5 + $0x18] sm:$0xff] }
  0x15   :  { %v182_v35 = vpack.c.bf16 %v161_v33, %v160_v32  ;;  %v158_v38 = vld [vmem:[#allocation5 + $0x90] sm:$0xff]  ;;  %v159_v39 = vld [vmem:[#allocation5 + $0x98] sm:$0xff]  ;;  %v173_v40 = vpack.c.bf16 %v143_v37, %v142_v36  ;;  %v140_v42 = vld [vmem:[#allocation5] sm:$0xff] }
  0x16   :  { %v181_v41 = vpack.c.bf16 %v159_v39, %v158_v38  ;;  %v141_v43 = vld [vmem:[#allocation5 + $0x8] sm:$0xff]  ;;  %v156_v44 = vld [vmem:[#allocation5 + $0x80] sm:$0xff]  ;;  %v46_v47 = vld [vmem:[#allocation2 + $0x10] sm:$0xff] }
  0x17   :  { %190 = vmatpush.bf16.msra.mxu0 %v177_v16  ;;  %420 = vmatpush.bf16.msra.mxu2 %v177_v16  ;;  %v157_v45 = vld [vmem:[#allocation5 + $0x88] sm:$0xff]  ;;  %v44_v46 = vld [vmem:[#allocation2] sm:$0xff]  ;;  %v172_v48 = vpack.c.bf16 %v141_v43, %v140_v42  ;;  %v78_v50 = vld [vmem:[#allocation2 + $0x110] sm:$0xff] }
  0x18   :  { %279 = vmatpush.bf16.msra.mxu1 %v185_v17  ;;  %428 = vmatpush.bf16.msra.mxu3 %v185_v17  ;;  %v76_v49 = vld [vmem:[#allocation2 + $0x100] sm:$0xff]  ;;  %v45_v51 = vld [vmem:[#allocation2 + $0x8] sm:$0xff]  ;;  %v180_v52 = vpack.c.bf16 %v157_v45, %v156_v44  ;;  %v47_v53 = vld [vmem:[#allocation2 + $0x18] sm:$0xff]  ;;  %v108_v56 = vpack.c.bf16 %v46_v47, %v44_v46 }
  0x19   :  { %v77_v54 = vld [vmem:[#allocation2 + $0x108] sm:$0xff]  ;;  %v79_v55 = vld [vmem:[#allocation2 + $0x118] sm:$0xff]  ;;  %v124_v57 = vpack.c.bf16 %v78_v50, %v76_v49  ;;  %v109_v58 = vpack.c.bf16 %v47_v53, %v45_v51  ;;  %v48_v60 = vld [vmem:[#allocation2 + $0x20] sm:$0xff] }
  0x1a   :  { %v125_v59 = vpack.c.bf16 %v79_v55, %v77_v54  ;;  %v50_v61 = vld [vmem:[#allocation2 + $0x30] sm:$0xff]  ;;  %v80_v62 = vld [vmem:[#allocation2 + $0x120] sm:$0xff]  ;;  %v49_v0 = vld [vmem:[#allocation2 + $0x28] sm:$0xff] }
  0x1b   :  { %191 = vmatpush.bf16.msra.mxu0 %v176_v22  ;;  %421 = vmatpush.bf16.msra.mxu2 %v176_v22  ;;  %v82_v63 = vld [vmem:[#allocation2 + $0x130] sm:$0xff]  ;;  %v51_v1 = vld [vmem:[#allocation2 + $0x38] sm:$0xff]  ;;  %v81_v2 = vld [vmem:[#allocation2 + $0x128] sm:$0xff]  ;;  %v110_v4 = vpack.c.bf16 %v50_v61, %v48_v60 }
  0x1c   :  { %280 = vmatpush.bf16.msra.mxu1 %v184_v23  ;;  %429 = vmatpush.bf16.msra.mxu3 %v184_v23  ;;  %v83_v3 = vld [vmem:[#allocation2 + $0x138] sm:$0xff]  ;;  %v126_v5 = vpack.c.bf16 %v82_v63, %v80_v62  ;;  %v111_v6 = vpack.c.bf16 %v51_v1, %v49_v0  ;;  %v52_v8 = vld [vmem:[#allocation2 + $0x40] sm:$0xff]  ;;  %v54_v9 = vld [vmem:[#allocation2 + $0x50] sm:$0xff] }
  0x1d   :  { %v127_v7 = vpack.c.bf16 %v83_v3, %v81_v2  ;;  %v84_v10 = vld [vmem:[#allocation2 + $0x140] sm:$0xff]  ;;  %v86_v11 = vld [vmem:[#allocation2 + $0x150] sm:$0xff]  ;;  %v53_v12 = vld [vmem:[#allocation2 + $0x48] sm:$0xff]  ;;  %v112_v16 = vpack.c.bf16 %v54_v9, %v52_v8 }
  0x1e   :  { %v55_v13 = vld [vmem:[#allocation2 + $0x58] sm:$0xff]  ;;  %v85_v14 = vld [vmem:[#allocation2 + $0x148] sm:$0xff]  ;;  %v128_v17 = vpack.c.bf16 %v86_v11, %v84_v10  ;;  %v56_v20 = vld [vmem:[#allocation2 + $0x60] sm:$0xff] }
  0x1f   :  { %192 = vmatpush.bf16.msra.mxu0 %v175_v28  ;;  %422 = vmatpush.bf16.msra.mxu2 %v175_v28  ;;  %v87_v15 = vld [vmem:[#allocation2 + $0x158] sm:$0xff]  ;;  %v113_v18 = vpack.c.bf16 %v55_v13, %v53_v12  ;;  %v58_v21 = vld [vmem:[#allocation2 + $0x70] sm:$0xff]  ;;  %v88_v22 = vld [vmem:[#allocation2 + $0x160] sm:$0xff] }
  0x20   :  { %281 = vmatpush.bf16.msra.mxu1 %v183_v29  ;;  %430 = vmatpush.bf16.msra.mxu3 %v183_v29  ;;  %v129_v19 = vpack.c.bf16 %v87_v15, %v85_v14  ;;  %v90_v23 = vld [vmem:[#allocation2 + $0x170] sm:$0xff]  ;;  %v57_v24 = vld [vmem:[#allocation2 + $0x68] sm:$0xff]  ;;  %v59_v25 = vld [vmem:[#allocation2 + $0x78] sm:$0xff]  ;;  %v114_v28 = vpack.c.bf16 %v58_v21, %v56_v20 }
  0x21   :  { %v89_v26 = vld [vmem:[#allocation2 + $0x168] sm:$0xff]  ;;  %v91_v27 = vld [vmem:[#allocation2 + $0x178] sm:$0xff]  ;;  %v130_v29 = vpack.c.bf16 %v90_v23, %v88_v22  ;;  %v115_v30 = vpack.c.bf16 %v59_v25, %v57_v24  ;;  %v60_v32 = vld [vmem:[#allocation2 + $0x80] sm:$0xff] }
  0x22   :  { %v131_v31 = vpack.c.bf16 %v91_v27, %v89_v26  ;;  %v62_v33 = vld [vmem:[#allocation2 + $0x90] sm:$0xff]  ;;  %v61_v36 = vld [vmem:[#allocation2 + $0x88] sm:$0xff]  ;;  %v63_v37 = vld [vmem:[#allocation2 + $0x98] sm:$0xff] }
  0x23   :  { %193 = vmatpush.bf16.msra.mxu0 %v174_v34  ;;  %423 = vmatpush.bf16.msra.mxu2 %v174_v34  ;;  %v92_v34 = vld [vmem:[#allocation2 + $0x180] sm:$0xff]  ;;  %v93_v38 = vld [vmem:[#allocation2 + $0x188] sm:$0xff]  ;;  %v95_v39 = vld [vmem:[#allocation2 + $0x198] sm:$0xff]  ;;  %v117_v42 = vpack.c.bf16 %v63_v37, %v61_v36 }
  0x24   :  { %282 = vmatpush.bf16.msra.mxu1 %v182_v35  ;;  %431 = vmatpush.bf16.msra.mxu3 %v182_v35  ;;  %v94_v35 = vld [vmem:[#allocation2 + $0x190] sm:$0xff]  ;;  %v133_v43 = vpack.c.bf16 %v95_v39, %v93_v38  ;;  %v64_v44 = vld [vmem:[#allocation2 + $0xa0] sm:$0xff]  ;;  %v67_v49 = vld [vmem:[#allocation2 + $0xb8] sm:$0xff] }
  0x25   :  { %v66_v45 = vld [vmem:[#allocation2 + $0xb0] sm:$0xff]  ;;  %v96_v46 = vld [vmem:[#allocation2 + $0x1a0] sm:$0xff]  ;;  %v97_v50 = vld [vmem:[#allocation2 + $0x1a8] sm:$0xff] }
  0x26   :  { %v98_v47 = vld [vmem:[#allocation2 + $0x1b0] sm:$0xff]  ;;  %v99_v51 = vld [vmem:[#allocation2 + $0x1b8] sm:$0xff]  ;;  %v69_v60 = vld [vmem:[#allocation2 + $0xc8] sm:$0xff] }
  0x27   :  { %194 = vmatpush.bf16.msra.mxu0 %v173_v40  ;;  %424 = vmatpush.bf16.msra.mxu2 %v173_v40  ;;  %v116_v40 = vpack.c.bf16 %v62_v33, %v60_v32  ;;  %v134_v53 = vpack.c.bf16 %v98_v47, %v96_v46  ;;  %v135_v55 = vpack.c.bf16 %v99_v51, %v97_v50  ;;  %v71_v61 = vld [vmem:[#allocation2 + $0xd8] sm:$0xff]  ;;  %v101_v62 = vld [vmem:[#allocation2 + $0x1c8] sm:$0xff] }
  0x28   :  { %283 = vmatpush.bf16.msra.mxu1 %v181_v41  ;;  %432 = vmatpush.bf16.msra.mxu3 %v181_v41  ;;  %v132_v41 = vpack.c.bf16 %v94_v35, %v92_v34  ;;  %v103_v63 = vld [vmem:[#allocation2 + $0x1d8] sm:$0xff]  ;;  %v121_v2 = vpack.c.bf16 %v71_v61, %v69_v60  ;;  %v73_v8 = vld [vmem:[#allocation2 + $0xe8] sm:$0xff] }
  0x29   :  { %v137_v3 = vpack.c.bf16 %v103_v63, %v101_v62  ;;  %v75_v9 = vld [vmem:[#allocation2 + $0xf8] sm:$0xff]  ;;  %v105_v10 = vld [vmem:[#allocation2 + $0x1e8] sm:$0xff] }
  0x2a   :  { %v107_v11 = vld [vmem:[#allocation2 + $0x1f8] sm:$0xff]  ;;  %v123_v14 = vpack.c.bf16 %v75_v9, %v73_v8 }
  0x2b   :  { %195 = vmatpush.bf16.msra.mxu0 %v172_v48  ;;  %425 = vmatpush.bf16.msra.mxu2 %v172_v48  ;;  %v65_v48 = vld [vmem:[#allocation2 + $0xa8] sm:$0xff]  ;;  %v139_v15 = vpack.c.bf16 %v107_v11, %v105_v10 }
  0x2c   :  { %284 = vmatpush.bf16.msra.mxu1 %v180_v52  ;;  %433 = vmatpush.bf16.msra.mxu3 %v180_v52  ;;  %v118_v52 = vpack.c.bf16 %v66_v45, %v64_v44  ;;  %v119_v54 = vpack.c.bf16 %v67_v49, %v65_v48 }
  0x2e   :  { %196 = vmatmul.bf16.vlgmr.msra.gmra.mxu0 %v108_v56  ;;  %236 = vmatmul.bf16.vlgmr.msra.gmra.mxu2 %v124_v57  ;;  %v68_v56 = vld [vmem:[#allocation2 + $0xc0] sm:$0xff]  ;;  %v70_v57 = vld [vmem:[#allocation2 + $0xd0] sm:$0xff] }
  0x2f   :  { %285 = vmatmul.bf16.vlgmr.msra.gmra.mxu1 %v109_v58  ;;  %325 = vmatmul.bf16.vlgmr.msra.gmra.mxu3 %v125_v59  ;;  %v100_v58 = vld [vmem:[#allocation2 + $0x1c0] sm:$0xff]  ;;  %v102_v59 = vld [vmem:[#allocation2 + $0x1d0] sm:$0xff]  ;;  %v120_v0 = vpack.c.bf16 %v70_v57, %v68_v56 }
  0x30   :  { %v136_v1 = vpack.c.bf16 %v102_v59, %v100_v58 }
  0x3e   :  { %201 = vmatmul.bf16.gmra.mxu0 %v110_v4  ;;  %241 = vmatmul.bf16.gmra.mxu2 %v126_v5  ;;  %v72_v4 = vld [vmem:[#allocation2 + $0xe0] sm:$0xff]  ;;  %v74_v5 = vld [vmem:[#allocation2 + $0xf0] sm:$0xff] }
  0x3f   :  { %290 = vmatmul.bf16.gmra.mxu1 %v111_v6  ;;  %330 = vmatmul.bf16.gmra.mxu3 %v127_v7  ;;  %v104_v6 = vld [vmem:[#allocation2 + $0x1e0] sm:$0xff]  ;;  %v106_v7 = vld [vmem:[#allocation2 + $0x1f0] sm:$0xff]  ;;  %v122_v12 = vpack.c.bf16 %v74_v5, %v72_v4 }
  0x40   :  { %v138_v13 = vpack.c.bf16 %v106_v7, %v104_v6 }
  0x4e   :  { %206 = vmatmul.bf16.gmra.mxu0 %v112_v16  ;;  %246 = vmatmul.bf16.gmra.mxu2 %v128_v17 }
  0x4f   :  { %295 = vmatmul.bf16.gmra.mxu1 %v113_v18  ;;  %335 = vmatmul.bf16.gmra.mxu3 %v129_v19 }
  0x5e   :  { %211 = vmatmul.bf16.gmra.mxu0 %v114_v28  ;;  %251 = vmatmul.bf16.gmra.mxu2 %v130_v29 }
  0x5f   :  { %300 = vmatmul.bf16.gmra.mxu1 %v115_v30  ;;  %340 = vmatmul.bf16.gmra.mxu3 %v131_v31 }
  0x6e   :  { %216 = vmatmul.bf16.gmra.mxu0 %v116_v40  ;;  %256 = vmatmul.bf16.gmra.mxu2 %v132_v41 }
  0x6f   :  { %305 = vmatmul.bf16.gmra.mxu1 %v117_v42  ;;  %345 = vmatmul.bf16.gmra.mxu3 %v133_v43 }
  0x7e   :  { %221 = vmatmul.bf16.gmra.mxu0 %v118_v52  ;;  %261 = vmatmul.bf16.gmra.mxu2 %v134_v53 }
  0x7f   :  { %310 = vmatmul.bf16.gmra.mxu1 %v119_v54  ;;  %350 = vmatmul.bf16.gmra.mxu3 %v135_v55 }
  0x8e   :  { %226 = vmatmul.bf16.gmra.mxu0 %v120_v0  ;;  %266 = vmatmul.bf16.gmra.mxu2 %v136_v1 }
  0x8f   :  { %315 = vmatmul.bf16.gmra.mxu1 %v121_v2  ;;  %355 = vmatmul.bf16.gmra.mxu3 %v137_v3 }
  0x9e   :  { %231 = vmatmul.bf16.gmra.mxu0 %v122_v12  ;;  %271 = vmatmul.bf16.gmra.mxu2 %v138_v13 }
  0x9f   :  { %320 = vmatmul.bf16.gmra.mxu1 %v123_v14  ;;  %360 = vmatmul.bf16.gmra.mxu3 %v139_v15 }
  0xab   :  { %v197_v16 = vpop.f32.mrf.mxu0 }
  0xac   :  { %v286_v17 = vpop.f32.mrf.mxu1 }
  0xad   :  { %v287_v18 = vadd.f32 %v286_v17, %v197_v16 }
  0xaf   :  { %366 = vst [vmem:[#allocation7] sm:$0xff] %v287_v18 }
  0xb1   :  { %v237_v19 = vpop.f32.mrf.mxu2 }
  0xb2   :  { %v326_v20 = vpop.f32.mrf.mxu3 }
  0xb3   :  { %v327_v21 = vadd.f32 %v326_v20, %v237_v19  ;;  %v199_v22 = vpop.f32.mrf.mxu0 }
  0xb4   :  { %v288_v23 = vpop.f32.mrf.mxu1 }
  0xb5   :  { %382 = vst [vmem:[#allocation7 + $0x80] sm:$0xff] %v327_v21  ;;  %v289_v24 = vadd.f32 %v288_v23, %v199_v22 }
  0xb7   :  { %367 = vst [vmem:[#allocation7 + $0x8] sm:$0xff] %v289_v24 }
  0xb9   :  { %v239_v25 = vpop.f32.mrf.mxu2 }
  0xba   :  { %v328_v26 = vpop.f32.mrf.mxu3 }
  0xbb   :  { %v329_v27 = vadd.f32 %v328_v26, %v239_v25  ;;  %v202_v28 = vpop.f32.mrf.mxu0 }
  0xbc   :  { %v291_v29 = vpop.f32.mrf.mxu1 }
  0xbd   :  { %383 = vst [vmem:[#allocation7 + $0x88] sm:$0xff] %v329_v27  ;;  %v292_v30 = vadd.f32 %v291_v29, %v202_v28 }
  0xbf   :  { %368 = vst [vmem:[#allocation7 + $0x10] sm:$0xff] %v292_v30 }
  0xc1   :  { %v242_v31 = vpop.f32.mrf.mxu2 }
  0xc2   :  { %v331_v32 = vpop.f32.mrf.mxu3 }
  0xc3   :  { %v332_v33 = vadd.f32 %v331_v32, %v242_v31  ;;  %v204_v34 = vpop.f32.mrf.mxu0 }
  0xc4   :  { %v293_v35 = vpop.f32.mrf.mxu1 }
  0xc5   :  { %384 = vst [vmem:[#allocation7 + $0x90] sm:$0xff] %v332_v33  ;;  %v294_v36 = vadd.f32 %v293_v35, %v204_v34 }
  0xc7   :  { %369 = vst [vmem:[#allocation7 + $0x18] sm:$0xff] %v294_v36 }
  0xc9   :  { %v244_v37 = vpop.f32.mrf.mxu2 }
  0xca   :  { %v333_v38 = vpop.f32.mrf.mxu3 }
  0xcb   :  { %v334_v39 = vadd.f32 %v333_v38, %v244_v37  ;;  %v207_v40 = vpop.f32.mrf.mxu0 }
  0xcc   :  { %v296_v41 = vpop.f32.mrf.mxu1 }
  0xcd   :  { %385 = vst [vmem:[#allocation7 + $0x98] sm:$0xff] %v334_v39  ;;  %v297_v42 = vadd.f32 %v296_v41, %v207_v40 }
  0xcf   :  { %370 = vst [vmem:[#allocation7 + $0x20] sm:$0xff] %v297_v42 }
  0xd1   :  { %v247_v43 = vpop.f32.mrf.mxu2 }
  0xd2   :  { %v336_v44 = vpop.f32.mrf.mxu3 }
  0xd3   :  { %v337_v45 = vadd.f32 %v336_v44, %v247_v43  ;;  %v209_v46 = vpop.f32.mrf.mxu0 }
  0xd4   :  { %v298_v47 = vpop.f32.mrf.mxu1 }
  0xd5   :  { %386 = vst [vmem:[#allocation7 + $0xa0] sm:$0xff] %v337_v45  ;;  %v299_v48 = vadd.f32 %v298_v47, %v209_v46 }
  0xd7   :  { %371 = vst [vmem:[#allocation7 + $0x28] sm:$0xff] %v299_v48 }
  0xd9   :  { %v249_v49 = vpop.f32.mrf.mxu2 }
  0xda   :  { %v338_v50 = vpop.f32.mrf.mxu3 }
  0xdb   :  { %v339_v51 = vadd.f32 %v338_v50, %v249_v49  ;;  %v212_v52 = vpop.f32.mrf.mxu0 }
  0xdc   :  { %v301_v53 = vpop.f32.mrf.mxu1 }
  0xdd   :  { %387 = vst [vmem:[#allocation7 + $0xa8] sm:$0xff] %v339_v51  ;;  %v302_v54 = vadd.f32 %v301_v53, %v212_v52 }
  0xdf   :  { %372 = vst [vmem:[#allocation7 + $0x30] sm:$0xff] %v302_v54 }
  0xe1   :  { %v252_v55 = vpop.f32.mrf.mxu2 }
  0xe2   :  { %v341_v56 = vpop.f32.mrf.mxu3 }
  0xe3   :  { %v342_v57 = vadd.f32 %v341_v56, %v252_v55  ;;  %v214_v58 = vpop.f32.mrf.mxu0 }
  0xe4   :  { %v303_v59 = vpop.f32.mrf.mxu1 }
  0xe5   :  { %388 = vst [vmem:[#allocation7 + $0xb0] sm:$0xff] %v342_v57  ;;  %v304_v60 = vadd.f32 %v303_v59, %v214_v58 }
  0xe7   :  { %373 = vst [vmem:[#allocation7 + $0x38] sm:$0xff] %v304_v60 }
  0xe9   :  { %v254_v61 = vpop.f32.mrf.mxu2 }
  0xea   :  { %v343_v62 = vpop.f32.mrf.mxu3 }
  0xeb   :  { %v344_v63 = vadd.f32 %v343_v62, %v254_v61  ;;  %v217_v0 = vpop.f32.mrf.mxu0 }
  0xec   :  { %v306_v1 = vpop.f32.mrf.mxu1 }
  0xed   :  { %389 = vst [vmem:[#allocation7 + $0xb8] sm:$0xff] %v344_v63  ;;  %v307_v2 = vadd.f32 %v306_v1, %v217_v0 }
  0xef   :  { %374 = vst [vmem:[#allocation7 + $0x40] sm:$0xff] %v307_v2 }
  0xf1   :  { %v257_v3 = vpop.f32.mrf.mxu2 }
  0xf2   :  { %v346_v4 = vpop.f32.mrf.mxu3 }
  0xf3   :  { %v347_v5 = vadd.f32 %v346_v4, %v257_v3  ;;  %v219_v6 = vpop.f32.mrf.mxu0 }
  0xf4   :  { %v308_v7 = vpop.f32.mrf.mxu1 }
  0xf5   :  { %390 = vst [vmem:[#allocation7 + $0xc0] sm:$0xff] %v347_v5  ;;  %v309_v8 = vadd.f32 %v308_v7, %v219_v6 }
  0xf7   :  { %375 = vst [vmem:[#allocation7 + $0x48] sm:$0xff] %v309_v8 }
  0xf9   :  { %v259_v9 = vpop.f32.mrf.mxu2 }
  0xfa   :  { %v348_v10 = vpop.f32.mrf.mxu3 }
  0xfb   :  { %v349_v11 = vadd.f32 %v348_v10, %v259_v9  ;;  %v222_v12 = vpop.f32.mrf.mxu0 }
  0xfc   :  { %v311_v13 = vpop.f32.mrf.mxu1 }
  0xfd   :  { %391 = vst [vmem:[#allocation7 + $0xc8] sm:$0xff] %v349_v11  ;;  %v312_v14 = vadd.f32 %v311_v13, %v222_v12 }
  0xff   :  { %376 = vst [vmem:[#allocation7 + $0x50] sm:$0xff] %v312_v14 }
 0x101   :  { %v262_v15 = vpop.f32.mrf.mxu2 }
 0x102   :  { %v351_v16 = vpop.f32.mrf.mxu3 }
 0x103   :  { %v352_v17 = vadd.f32 %v351_v16, %v262_v15  ;;  %v224_v18 = vpop.f32.mrf.mxu0 }
 0x104   :  { %v313_v19 = vpop.f32.mrf.mxu1 }
 0x105   :  { %392 = vst [vmem:[#allocation7 + $0xd0] sm:$0xff] %v352_v17  ;;  %v314_v20 = vadd.f32 %v313_v19, %v224_v18 }
 0x107   :  { %377 = vst [vmem:[#allocation7 + $0x58] sm:$0xff] %v314_v20 }
 0x109   :  { %v264_v21 = vpop.f32.mrf.mxu2 }
 0x10a   :  { %v353_v22 = vpop.f32.mrf.mxu3 }
 0x10b   :  { %v354_v23 = vadd.f32 %v353_v22, %v264_v21  ;;  %v227_v24 = vpop.f32.mrf.mxu0 }
 0x10c   :  { %v316_v25 = vpop.f32.mrf.mxu1 }
 0x10d   :  { %393 = vst [vmem:[#allocation7 + $0xd8] sm:$0xff] %v354_v23  ;;  %v317_v26 = vadd.f32 %v316_v25, %v227_v24 }
 0x10f   :  { %378 = vst [vmem:[#allocation7 + $0x60] sm:$0xff] %v317_v26 }
 0x111   :  { %v267_v27 = vpop.f32.mrf.mxu2 }
 0x112   :  { %v356_v28 = vpop.f32.mrf.mxu3 }
 0x113   :  { %v357_v29 = vadd.f32 %v356_v28, %v267_v27  ;;  %v229_v30 = vpop.f32.mrf.mxu0 }
 0x114   :  { %v318_v31 = vpop.f32.mrf.mxu1 }
 0x115   :  { %394 = vst [vmem:[#allocation7 + $0xe0] sm:$0xff] %v357_v29  ;;  %v319_v32 = vadd.f32 %v318_v31, %v229_v30 }
 0x117   :  { %379 = vst [vmem:[#allocation7 + $0x68] sm:$0xff] %v319_v32 }
 0x119   :  { %v269_v33 = vpop.f32.mrf.mxu2 }
 0x11a   :  { %v358_v34 = vpop.f32.mrf.mxu3 }
 0x11b   :  { %v359_v35 = vadd.f32 %v358_v34, %v269_v33  ;;  %v232_v36 = vpop.f32.mrf.mxu0 }
 0x11c   :  { %v321_v37 = vpop.f32.mrf.mxu1 }
 0x11d   :  { %395 = vst [vmem:[#allocation7 + $0xe8] sm:$0xff] %v359_v35  ;;  %v322_v38 = vadd.f32 %v321_v37, %v232_v36 }
 0x11f   :  { %380 = vst [vmem:[#allocation7 + $0x70] sm:$0xff] %v322_v38 }
 0x121   :  { %v272_v39 = vpop.f32.mrf.mxu2 }
 0x122   :  { %v361_v40 = vpop.f32.mrf.mxu3 }
 0x123   :  { %v362_v41 = vadd.f32 %v361_v40, %v272_v39  ;;  %v234_v42 = vpop.f32.mrf.mxu0 }
 0x124   :  { %v323_v43 = vpop.f32.mrf.mxu1 }
 0x125   :  { %396 = vst [vmem:[#allocation7 + $0xf0] sm:$0xff] %v362_v41  ;;  %v324_v44 = vadd.f32 %v323_v43, %v234_v42 }
 0x127   :  { %381 = vst [vmem:[#allocation7 + $0x78] sm:$0xff] %v324_v44 }
 0x129   :  { %v274_v45 = vpop.f32.mrf.mxu2 }
 0x12a   :  { %v363_v46 = vpop.f32.mrf.mxu3 }
 0x12b   :  { %v364_v47 = vadd.f32 %v363_v46, %v274_v45 }
 0x12d   :  { %397 = vst [vmem:[#allocation7 + $0xf8] sm:$0xff] %v364_v47 }
 0x12e   :  { %410 = dma.vmem_to_hbm [thread:$0]  %s403_s1, 4096, %s405_s25, [#allocation4], %s523_s21, %s523_s21, %s524_s22  }
 0x12f   :  { %517 = dma.done.wait [#allocation4], 4096  }
 0x130   :  { %518 = vsyncadd [#allocation4], 4294963200 }
 0x131   :  { %415 = vsyncpa [#allocation3], 1 }
 0x132   :  { %416 = vsyncpa [#allocation6], 1 }
 0x133   :  { %417 = vsyncpa [#allocation4], 1 }

</bundles_post_ra>
